<compile_context>
chip_gen: v7x
topology: tpu7x:2x2x1
jax: 0.10.0
libtpu: 0.0.40
codegen_flags: <defaults>
</compile_context>

<pallas_src>
import math

import jax
import jax.numpy as jnp
from jax.experimental import pallas as pl
from jax.experimental.pallas import tpu as pltpu

LANES = 128            # lane width (fast axis)
MAX_BLOCK_ROWS = 2048  # (2048, 128) f32 = 1 MiB per block


def _round_up(n, m):
    return ((n + m - 1) // m) * m


def linearnet_kernel(wb_ref, x_ref, o_ref):
    # wb_ref: SMEM f32[2] = (w1, b1);  x_ref/o_ref: VMEM (block_rows, 128) lane-dense tiles.
    w = wb_ref[0]
    b = wb_ref[1]
    # Pure VPU: broadcast scalar multiply-add in f32, cast back to the storage dtype.
    y = x_ref[...].astype(jnp.float32) * w + b
    o_ref[...] = y.astype(o_ref.dtype)


def linearnet_forward(x, params):
    """x: (B, 1).  Applies y = fc1(x) exactly like the PyTorch forward (fc2 is unused)."""
    w1 = params["fc1_w"]   # (1, 1)
    b1 = params["fc1_b"]   # (1,)

    B = x.shape[0]
    orig_dtype = x.dtype
    if B == 0:
        return jnp.zeros((0, 1), orig_dtype)

    # Keep bf16/f32 batches in their native dtype for the DMAs (halves HBM bytes for bf16).
    compute_dtype = orig_dtype if orig_dtype in (jnp.bfloat16, jnp.float32) else jnp.float32
    itemsize = jnp.dtype(compute_dtype).itemsize

    # Lane-dense layout: flatten the batch; pad only to the next multiple of 128 lanes
    # (<= 127 elements).  When B is already a multiple of 128 there is no pad and no slice.
    padded = _round_up(B, LANES)
    x_flat = jnp.reshape(x, (B,)).astype(compute_dtype)
    if padded != B:
        x_flat = jnp.pad(x_flat, (0, padded - B))
    rows = padded // LANES
    x2d = jnp.reshape(x_flat, (rows, LANES))

    # Large blocks, but at least 2 grid steps when the data spans more than one minimal
    # tile (lets the "parallel" axis shard across both v7x TensorCores).  The last block
    # may be partial; Pallas masks the out-of-bounds portion automatically.
    block_rows = min(MAX_BLOCK_ROWS, _round_up(max(pl.cdiv(rows, 2), 1), 8))
    n_tiles = pl.cdiv(rows, block_rows)

    # Pack the two fc1 scalars into one SMEM array -> a single parameter DMA.
    wb = jnp.stack([jnp.reshape(w1, ()), jnp.reshape(b1, ())]).astype(jnp.float32)

    out2d = pl.pallas_call(
        linearnet_kernel,
        out_shape=jax.ShapeDtypeStruct((rows, LANES), compute_dtype),
        grid=(n_tiles,),
        in_specs=[
            pl.BlockSpec(memory_space=pltpu.MemorySpace.SMEM),          # packed (w1, b1)
            pl.BlockSpec((block_rows, LANES), lambda i: (i, 0)),        # batch tile
        ],
        out_specs=pl.BlockSpec((block_rows, LANES), lambda i: (i, 0)),
        compiler_params=pltpu.CompilerParams(
            dimension_semantics=("parallel",),
            vmem_limit_bytes=32 << 20,
        ),
        cost_estimate=pl.CostEstimate(
            flops=2 * padded,
            transcendentals=0,
            bytes_accessed=2 * padded * itemsize,
        ),
    )(wb, x2d)

    out = jnp.reshape(out2d, (padded,))
    if padded != B:
        out = out[:B]
    return jnp.reshape(out, (B, 1)).astype(orig_dtype)


def init_params(key):
    """Mirror PyTorch's default nn.Linear init: uniform in +/- 1/sqrt(fan_in); fan_in = 1."""
    k1, k2, k3, k4 = jax.random.split(key, 4)
    bound = 1.0 / math.sqrt(1.0)
    return {
        "fc1_w": jax.random.uniform(k1, (1, 1), jnp.float32, -bound, bound),
        "fc1_b": jax.random.uniform(k2, (1,), jnp.float32, -bound, bound),
        # fc2 exists in the module but is not used in forward.
        "fc2_w": jax.random.uniform(k3, (1, 1), jnp.float32, -bound, bound),
        "fc2_b": jax.random.uniform(k4, (1,), jnp.float32, -bound, bound),
    }


def linearnet_reference(x, params):
    """Pure-JAX reference identical to the PyTorch forward (only fc1 is applied)."""
    return (x.astype(jnp.float32) @ params["fc1_w"].T + params["fc1_b"]).astype(x.dtype)


if __name__ == "__main__":
    key = jax.random.PRNGKey(0)
    kp, kx1, kx2, kx3 = jax.random.split(key, 4)
    params = init_params(kp)

    # Small shape consistent with the module: (batch=8, in_features=1).
    x_small = jax.random.normal(kx1, (8, 1), jnp.float32)
    out_small = jax.block_until_ready(linearnet_forward(x_small, params))
    ref_small = linearnet_reference(x_small, params)
    assert out_small.shape == (8, 1)
    assert jnp.allclose(out_small, ref_small, atol=1e-6, rtol=1e-6), "mismatch (B=8)"

    # Batch that is a multiple of 128 -> zero-copy wrapper path (no pad / no slice).
    x_mid = jax.random.normal(kx2, (1024, 1), jnp.float32)
    out_mid = jax.block_until_ready(linearnet_forward(x_mid, params))
    ref_mid = linearnet_reference(x_mid, params)
    assert out_mid.shape == (1024, 1)
    assert jnp.allclose(out_mid, ref_mid, atol=1e-6, rtol=1e-6), "mismatch (B=1024)"

    # Batch that is not a multiple of 128 -> small pad + slice, multi-step parallel grid
    # with a masked partial last block.
    x_big = jax.random.normal(kx3, (2050, 1), jnp.float32)
    out_big = jax.block_until_ready(linearnet_forward(x_big, params))
    ref_big = linearnet_reference(x_big, params)
    assert out_big.shape == (2050, 1)
    assert jnp.allclose(out_big, ref_big, atol=1e-6, rtol=1e-6), "mismatch (B=2050)"

    # bf16 end-to-end path (half the HBM bytes; FMA still done in f32 in-register).
    x_bf16 = x_big.astype(jnp.bfloat16)
    out_bf16 = jax.block_until_ready(linearnet_forward(x_bf16, params))
    ref_bf16 = linearnet_reference(x_bf16, params)
    assert out_bf16.dtype == jnp.bfloat16 and out_bf16.shape == (2050, 1)
    assert jnp.allclose(out_bf16.astype(jnp.float32), ref_bf16.astype(jnp.float32),
                        atol=2e-2, rtol=2e-2), "mismatch (bf16)"

    print("KERNEL_OK")
</pallas_src>

<mosaic_0001>
module attributes {stable_mosaic.version = 11 : i64} {
  func.func @linearnet_kernel(%arg0: i32, %arg1: memref<2xf32, #tpu.memory_space<smem>>, %arg2: memref<8x128xf32, #tpu.memory_space<vmem>>, %arg3: memref<8x128xf32, #tpu.memory_space<vmem>>) attributes {dimension_semantics = [#tpu.dimension_semantics<parallel>], iteration_bounds = array<i64: 1>, scalar_prefetch = 0 : i64, scratch_operands = 0 : i64, tpu.core_type = #tpu.core_type<tc>, window_params = [{transform_indices = @transform_0, window_bounds = array<i64: 2>}, {transform_indices = @transform_1, window_bounds = array<i64: 8, 128>}, {transform_indices = @transform_2, window_bounds = array<i64: 8, 128>}]} {
    %c0 = arith.constant 0 : index
    %0 = memref.load %arg1[%c0] : memref<2xf32, #tpu.memory_space<smem>>
    %c1 = arith.constant 1 : index
    %1 = memref.load %arg1[%c1] : memref<2xf32, #tpu.memory_space<smem>>
    %c0_0 = arith.constant 0 : index
    %c0_1 = arith.constant 0 : index
    %2 = vector.load %arg2[%c0_0, %c0_1] : memref<8x128xf32, #tpu.memory_space<vmem>>, vector<8x128xf32>
    %3 = vector.broadcast %0 : f32 to vector<8x128xf32>
    %4 = arith.mulf %2, %3 : vector<8x128xf32>
    %5 = vector.broadcast %1 : f32 to vector<8x128xf32>
    %6 = arith.addf %4, %5 : vector<8x128xf32>
    %c0_2 = arith.constant 0 : index
    %c0_3 = arith.constant 0 : index
    %7 = vector.load %arg3[%c0_2, %c0_3] : memref<8x128xf32, #tpu.memory_space<vmem>>, vector<8x128xf32>
    tpu.vector_store %arg3[%c0_2, %c0_3], %6 {strides = array<i32>} : memref<8x128xf32, #tpu.memory_space<vmem>>, vector<8x128xf32>,
    return
  }
  func.func @transform_0(%arg0: i32) -> i32 {
    %c0_i32 = arith.constant 0 : i32
    %c0_i32_0 = arith.constant 0 : i32
    return %c0_i32 : i32
  }
  func.func @transform_1(%arg0: i32) -> (i32, i32) {
    %c0_i32 = arith.constant 0 : i32
    %c0_i32_0 = arith.constant 0 : i32
    return %arg0, %c0_i32 : i32, i32
  }
  func.func @transform_2(%arg0: i32) -> (i32, i32) {
    %c0_i32 = arith.constant 0 : i32
    %c0_i32_0 = arith.constant 0 : i32
    return %arg0, %c0_i32 : i32, i32
  }
}

</mosaic_0001>

<bundles_post_ra>
// kernel: tpu_custom_call.1
= control target key start
LH: loop header
LB: loop body
LE: loop exit
PB: predicated region body
PF: predicated region fallthrough
CT: control target
= control target key end

     0   :  { %7 = vsyncpa [#allocation4], 0  ;;  %s135_s0 = inlined_call_operand.hbm [shape: f32[2], index: 0, kind: input, shape index: {}]   ;;  %s136_s1 = inlined_call_operand.vmem [shape: f32[1,128], index: 1, kind: input, shape index: {}]   ;;  %s137_s2 = inlined_call_operand.hbm [shape: f32[1,128], index: 2, kind: output, shape index: {}]  }
   0x1   :  { %8 = vsyncpa [#allocation3], 0  ;;  %s53_s11 = scalar_lea.hbm %s135_s0, 16 }
   0x2   :  { %p54_p0 = scmp.ne.s32.totalorder %s135_s0, %s53_s11  ;;  %p57_p1 = scmp.lt.u32.totalorder %s53_s11, %s135_s0 }
   0x4   :  { %p59_p2 = pnand %p57_p1, %p54_p0 }
   0x6   :  { %62 = shalt.err (!%p59_p2)
}
   0x7   :  { %s89_s16 = smov [#allocation2]  }
   0x8   :  { %16 = dma.hbm_to_smem %s135_s0, 16, %s89_s16, [#allocation4]  }
   0x9   :  { %85 = dma.done.wait [#allocation4], 16  }
   0xa   :  { %86 = vsyncadd [#allocation4], 4294967280 }
   0xb   :  { %22 = sfence }
   0xc   :  { %s23_s19 = sld [smem:[#allocation2]]  ;;  %s48_s20 = sld [smem:[#allocation2 + $0x1]]  ;;  %v25_v0 = vld [vmem:[%s136_s1] sm:$0xff] }
  0x12   :  { %v26_v1 = vstv %s23_s19  ;;  %v28_v2 = vstv %s48_s20 }
  0x13   :  { %v27_v3 = vmul.f32 %v26_v1, %v25_v0 }
  0x15   :  { %v29_v4 = vadd.f32 %v28_v2, %v27_v3 }
  0x17   :  { %30 = vst [vmem:[#allocation5] sm:$0xff] %v29_v4 }
  0x18   :  { %35 = vsyncadd [#allocation3], 112  ;;  %s90_s23 = smov [#allocation5]  }
  0x19   :  { %s36_s24 = sshll.u32 %s90_s23, 4  ;;  %s37_s24 = int_to_ptr.vmem [resolvable:$true] %s36_s24 }
  0x1a   :  { %s63_s25 = scalar_lea.vmem %s37_s24, 16  ;;  %s67_s0 = scalar_lea.vmem %s37_s24, 128 }
  0x1b   :  { %p64_p3 = scmp.ne.s32.totalorder %s37_s24, %s63_s25  ;;  %p68_p4 = scmp.lt.s32.totalorder %s37_s24, %s37_s24 }
  0x1c   :  { %p69_p5 = scmp.lt.s32.totalorder %s67_s0, %s63_s25 }
  0x1e   :  { %p70_p6 = por %p69_p5, %p68_p4 }
  0x20   :  { %p71_p7 = pnand %p70_p6, %p64_p3 }
  0x22   :  { %74 = shalt.err (!%p71_p7)
}
  0x23   :  { %s75_s1 = scalar_lea.hbm %s137_s2, 16 }
  0x24   :  { %p76_p8 = scmp.ne.s32.totalorder %s137_s2, %s75_s1  ;;  %p79_p9 = scmp.lt.u32.totalorder %s75_s1, %s137_s2 }
  0x26   :  { %p81_p10 = pnand %p79_p9, %p76_p8 }
  0x28   :  { %84 = shalt.err (!%p81_p10)
}
  0x29   :  { %s91_s4 = smov 16   ;;  %s92_s5 = smov 1  }
  0x2a   :  { %42 = dma.vmem_to_hbm [thread:$0]  %s37_s24, 16, %s137_s2, [#allocation3], %s91_s4, %s91_s4, %s92_s5  }
  0x2b   :  { %87 = dma.done.wait [#allocation3], 128  }
  0x2c   :  { %88 = vsyncadd [#allocation3], 4294967168 }
  0x2d   :  { %46 = vsyncpa [#allocation3], 1 }
  0x2e   :  { %47 = vsyncpa [#allocation4], 1 }

</bundles_post_ra>
